<compile_context>
chip_gen: v7x
topology: tpu7x:2x2x1
jax: 0.10.0
libtpu: 0.0.40
codegen_flags: <defaults>
</compile_context>

<pallas_src>
import jax
import jax.numpy as jnp
from jax.experimental import pallas as pl
from jax.experimental.pallas import tpu as pltpu

_NEG_FILL = -1e30  # finite "-inf" so 0 * fill == 0 inside the pooling select matmul


def _fold_bn(w, gamma, beta, mean, var, eps=1e-5):
    """Fold eval-mode BatchNorm1d into the bias-free conv that precedes it."""
    scale = gamma / jnp.sqrt(var + eps)                   # (C_out,)
    w_f = w.astype(jnp.float32) * scale[:, None, None]    # (C_out, C_in, K)
    b_f = beta - mean * scale                             # (C_out,)
    return w_f, b_f


def _make_block_kernel(*, nb, c_in, c_out, k, l, pad, ds, l_out, proj):
    l_c = l_out * ds

    def kernel(*refs):
        if proj and ds > 1:
            (x_ref, w1_ref, b1_ref, w2_ref, b2_ref, ws_ref, bs_ref, sel_ref,
             o_ref, hpad_ref, rpool_ref, spool_ref) = refs
        elif proj:
            (x_ref, w1_ref, b1_ref, w2_ref, b2_ref, ws_ref, bs_ref,
             o_ref, hpad_ref) = refs
        else:
            (x_ref, w1_ref, b1_ref, w2_ref, b2_ref, o_ref, hpad_ref) = refs

        # Zero the padded conv-2 input scratch (gives the zero halo); fill pool scratch.
        hpad_ref[...] = jnp.zeros(hpad_ref.shape, jnp.float32)
        if proj and ds > 1:
            rpool_ref[...] = jnp.full(rpool_ref.shape, _NEG_FILL, jnp.float32)
            spool_ref[...] = jnp.full(spool_ref.shape, _NEG_FILL, jnp.float32)

        for b in range(nb):                                  # static unroll over batch block
            # ---- conv1 (+ folded BN1) + SiLU --------------------------------
            acc = jnp.zeros((c_out, l), jnp.float32)
            for t in range(k):                               # taps as shifted matmuls
                xt = x_ref[b, :, pl.ds(t, l)]                # (c_in, l) window of padded x
                acc = acc + jnp.dot(w1_ref[t], xt, preferred_element_type=jnp.float32)
            h = acc + b1_ref[...]
            h = h * jax.nn.sigmoid(h)                        # SiLU
            hpad_ref[b, :, pl.ds(pad, l)] = h                # write inside zero halo

            # ---- conv2 (+ folded BN2) ---------------------------------------
            acc2 = jnp.zeros((c_out, l), jnp.float32)
            for t in range(k):
                ht = hpad_ref[b, :, pl.ds(t, l)]
                acc2 = acc2 + jnp.dot(w2_ref[t], ht, preferred_element_type=jnp.float32)
            r = acc2 + b2_ref[...]

            if proj:
                # ---- shortcut conv (+ folded BN) ----------------------------
                acc_s = jnp.zeros((c_out, l), jnp.float32)
                for t in range(k):
                    xt = x_ref[b, :, pl.ds(t, l)]
                    acc_s = acc_s + jnp.dot(ws_ref[t], xt, preferred_element_type=jnp.float32)
                s = acc_s + bs_ref[...]
                if ds > 1:
                    # MaxPool1d(ds, ceil_mode=True): sliding max over ds shifted ref
                    # windows, then 0/1 select-matmul to keep every ds-th lane
                    # (no lane-axis reshapes or strided value slices).
                    rpool_ref[b, :, pl.ds(0, l)] = r
                    spool_ref[b, :, pl.ds(0, l)] = s
                    sl_r = rpool_ref[b, :, pl.ds(0, l_c)]
                    sl_s = spool_ref[b, :, pl.ds(0, l_c)]
                    for j in range(1, ds):
                        sl_r = jnp.maximum(sl_r, rpool_ref[b, :, pl.ds(j, l_c)])
                        sl_s = jnp.maximum(sl_s, spool_ref[b, :, pl.ds(j, l_c)])
                    sel = sel_ref[...]
                    y = (jnp.dot(sl_r, sel, preferred_element_type=jnp.float32) +
                         jnp.dot(sl_s, sel, preferred_element_type=jnp.float32))
                else:
                    y = r + s
            else:
                xc = x_ref[b, :, pl.ds(pad, l)].astype(jnp.float32)  # identity shortcut
                y = r + xc

            y = y * jax.nn.sigmoid(y)                        # final SiLU
            o_ref[b] = y.astype(o_ref.dtype)

    return kernel


def basic_block_pool(x, params, *, kernel_size=3, downsample=1, block_n=1):
    """Fused BasicBlockPool forward. x: (N, C_in, L) -> (N, C_out, ceil(L/downsample))."""
    n, c_in, l = x.shape
    k = kernel_size
    pad = k // 2
    ds = int(downsample)
    assert n % block_n == 0, "block_n must divide the batch size"

    w1f, b1f = _fold_bn(params["conv1_w"], params["bn1_gamma"], params["bn1_beta"],
                        params["bn1_mean"], params["bn1_var"])
    w2f, b2f = _fold_bn(params["conv2_w"], params["bn2_gamma"], params["bn2_beta"],
                        params["bn2_mean"], params["bn2_var"])
    c_out = w1f.shape[0]
    proj = (ds != 1) or (c_in != c_out)

    l_out = -(-l // ds) if proj else l
    l_c = l_out * ds
    l_ext = l_c + ds - 1
    lp = l + 2 * pad

    # Wrapper-side layout plumbing: zero-pad L once, put conv taps on the leading axis.
    x_p = jnp.pad(x, ((0, 0), (0, 0), (pad, pad)))
    taps = lambda w: jnp.transpose(w, (2, 0, 1)).astype(jnp.float32)   # (K, C_out, C_src)
    col = lambda b: b.reshape(-1, 1).astype(jnp.float32)               # (C_out, 1)

    inputs = [x_p, taps(w1f), col(b1f), taps(w2f), col(b2f)]
    in_specs = [
        pl.BlockSpec((block_n, c_in, lp), lambda i: (i, 0, 0)),
        pl.BlockSpec((k, c_out, c_in), lambda i: (0, 0, 0)),
        pl.BlockSpec((c_out, 1), lambda i: (0, 0)),
        pl.BlockSpec((k, c_out, c_out), lambda i: (0, 0, 0)),
        pl.BlockSpec((c_out, 1), lambda i: (0, 0)),
    ]
    scratch = [pltpu.VMEM((block_n, c_out, lp), jnp.float32)]

    if proj:
        wsf, bsf = _fold_bn(params["convs_w"], params["bns_gamma"], params["bns_beta"],
                            params["bns_mean"], params["bns_var"])
        inputs += [taps(wsf), col(bsf)]
        in_specs += [
            pl.BlockSpec((k, c_out, c_in), lambda i: (0, 0, 0)),
            pl.BlockSpec((c_out, 1), lambda i: (0, 0)),
        ]
        if ds > 1:
            sel = (jnp.arange(l_c)[:, None] == ds * jnp.arange(l_out)[None, :]
                   ).astype(jnp.float32)                               # (L_c, L_out)
            inputs += [sel]
            in_specs += [pl.BlockSpec((l_c, l_out), lambda i: (0, 0))]
            scratch += [pltpu.VMEM((block_n, c_out, l_ext), jnp.float32),
                        pltpu.VMEM((block_n, c_out, l_ext), jnp.float32)]

    kernel = _make_block_kernel(nb=block_n, c_in=c_in, c_out=c_out, k=k, l=l,
                                pad=pad, ds=ds, l_out=l_out, proj=proj)

    return pl.pallas_call(
        kernel,
        out_shape=jax.ShapeDtypeStruct((n, c_out, l_out), x.dtype),
        grid=(n // block_n,),
        in_specs=in_specs,
        out_specs=pl.BlockSpec((block_n, c_out, l_out), lambda i: (i, 0, 0)),
        scratch_shapes=scratch,
        compiler_params=pltpu.CompilerParams(
            dimension_semantics=("parallel",)),      # batch axis -> both TCs on v7x
    )(*inputs)


# ----------------------------- pure-JAX reference -----------------------------
def basic_block_pool_reference(x, params, *, kernel_size=3, downsample=1):
    k = kernel_size
    pad = k // 2
    ds = int(downsample)
    n, c_in, l = x.shape

    def conv_bn(v, w, g, b, m, var):
        wf, bf = _fold_bn(w, g, b, m, var)
        vp = jnp.pad(v.astype(jnp.float32), ((0, 0), (0, 0), (pad, pad)))
        y = jnp.zeros((v.shape[0], wf.shape[0], l), jnp.float32)
        for t in range(k):
            y = y + jnp.einsum('oi,bil->bol', wf[:, :, t], vp[:, :, t:t + l])
        return y + bf[None, :, None]

    def silu(v):
        return v * jax.nn.sigmoid(v)

    def maxpool_ceil(v, d):
        if d == 1:
            return v
        n_, c_, l_ = v.shape
        lo = -(-l_ // d)
        vp = jnp.pad(v, ((0, 0), (0, 0), (0, lo * d - l_)), constant_values=_NEG_FILL)
        return jnp.max(vp.reshape(n_, c_, lo, d), axis=-1)

    c_out = params["conv1_w"].shape[0]
    proj = (ds != 1) or (c_in != c_out)

    h = silu(conv_bn(x, params["conv1_w"], params["bn1_gamma"], params["bn1_beta"],
                     params["bn1_mean"], params["bn1_var"]))
    r = conv_bn(h, params["conv2_w"], params["bn2_gamma"], params["bn2_beta"],
                params["bn2_mean"], params["bn2_var"])
    if proj:
        s = conv_bn(x, params["convs_w"], params["bns_gamma"], params["bns_beta"],
                    params["bns_mean"], params["bns_var"])
        y = silu(maxpool_ceil(r, ds) + maxpool_ceil(s, ds))
    else:
        y = silu(r + x.astype(jnp.float32))
    return y.astype(x.dtype)


if __name__ == "__main__":
    root = jax.random.PRNGKey(0)

    def make_params(key, c_in, c_out, k, proj):
        names = ["conv1", "conv2"] + (["convs"] if proj else [])
        keys = jax.random.split(key, 5 * len(names))
        p = {}
        for i, name in enumerate(names):
            kw, kg, kb, km, kv = keys[5 * i:5 * i + 5]
            src = c_in if name in ("conv1", "convs") else c_out
            bn = name.replace("conv", "bn")
            p[f"{name}_w"] = 0.3 * jax.random.normal(kw, (c_out, src, k), jnp.float32)
            p[f"{bn}_gamma"] = 1.0 + 0.1 * jax.random.normal(kg, (c_out,), jnp.float32)
            p[f"{bn}_beta"] = 0.1 * jax.random.normal(kb, (c_out,), jnp.float32)
            p[f"{bn}_mean"] = 0.1 * jax.random.normal(km, (c_out,), jnp.float32)
            p[f"{bn}_var"] = jax.random.uniform(kv, (c_out,), jnp.float32, 0.5, 1.5)
        return p

    k1, k2, k3, k4 = jax.random.split(root, 4)

    # Config 1: identity shortcut (downsample=1, in_channels == out_channels)
    n, c, l = 2, 4, 16
    x1 = jax.random.normal(k1, (n, c, l), jnp.float32)
    p1 = make_params(k2, c, c, 3, proj=False)
    out1 = jax.block_until_ready(
        basic_block_pool(x1, p1, kernel_size=3, downsample=1, block_n=1))
    ref1 = basic_block_pool_reference(x1, p1, kernel_size=3, downsample=1)
    assert out1.shape == (n, c, l), out1.shape
    assert jnp.allclose(out1, ref1, atol=1e-3, rtol=1e-3), "identity-branch mismatch"

    # Config 2: projection shortcut (4->8 channels) + MaxPool1d(2, ceil_mode=True), odd L
    n2, cin2, cout2, l2, ds2 = 2, 4, 8, 15, 2
    x2 = jax.random.normal(k3, (n2, cin2, l2), jnp.float32)
    p2 = make_params(k4, cin2, cout2, 3, proj=True)
    out2 = jax.block_until_ready(
        basic_block_pool(x2, p2, kernel_size=3, downsample=ds2, block_n=1))
    ref2 = basic_block_pool_reference(x2, p2, kernel_size=3, downsample=ds2)
    assert out2.shape == (n2, cout2, (l2 + ds2 - 1) // ds2), out2.shape
    assert jnp.allclose(out2, ref2, atol=1e-3, rtol=1e-3), "projection-branch mismatch"

    print("KERNEL_OK")
</pallas_src>

<mosaic_0001>
module attributes {stable_mosaic.version = 11 : i64} {
  func.func @kernel(%arg0: i32, %arg1: memref<1x4x18xf32, #tpu.memory_space<vmem>>, %arg2: memref<3x4x4xf32, #tpu.memory_space<vmem>>, %arg3: memref<4x1xf32, #tpu.memory_space<vmem>>, %arg4: memref<3x4x4xf32, #tpu.memory_space<vmem>>, %arg5: memref<4x1xf32, #tpu.memory_space<vmem>>, %arg6: memref<1x4x16xf32, #tpu.memory_space<vmem>>, %arg7: memref<1x4x18xf32, #tpu.memory_space<vmem>>) attributes {dimension_semantics = [#tpu.dimension_semantics<parallel>], iteration_bounds = array<i64: 2>, scalar_prefetch = 0 : i64, scratch_operands = 1 : i64, tpu.core_type = #tpu.core_type<tc>, window_params = [{transform_indices = @transform_0, window_bounds = array<i64: 1, 4, 18>}, {pipeline_mode = #tpu.pipeline_mode<synchronous>, transform_indices = @transform_1, window_bounds = array<i64: 3, 4, 4>}, {pipeline_mode = #tpu.pipeline_mode<synchronous>, transform_indices = @transform_2, window_bounds = array<i64: 4, 1>}, {pipeline_mode = #tpu.pipeline_mode<synchronous>, transform_indices = @transform_3, window_bounds = array<i64: 3, 4, 4>}, {pipeline_mode = #tpu.pipeline_mode<synchronous>, transform_indices = @transform_4, window_bounds = array<i64: 4, 1>}, {transform_indices = @transform_5, window_bounds = array<i64: 1, 4, 16>}]} {
    %cst = arith.constant 0.000000e+00 : f32
    %0 = vector.broadcast %cst : f32 to vector<1x4x18xf32>
    %c0 = arith.constant 0 : index
    %c0_0 = arith.constant 0 : index
    %c0_1 = arith.constant 0 : index
    %1 = vector.load %arg7[%c0, %c0_0, %c0_1] : memref<1x4x18xf32, #tpu.memory_space<vmem>>, vector<1x4x18xf32>
    tpu.vector_store %arg7[%c0, %c0_0, %c0_1], %0 {strides = array<i32>} : memref<1x4x18xf32, #tpu.memory_space<vmem>>, vector<1x4x18xf32>,
    %cst_2 = arith.constant 0.000000e+00 : f32
    %2 = vector.broadcast %cst_2 : f32 to vector<4x16xf32>
    %c0_3 = arith.constant 0 : index
    %c0_4 = arith.constant 0 : index
    %c0_5 = arith.constant 0 : index
    %3 = vector.load %arg1[%c0_3, %c0_4, %c0_5] : memref<1x4x18xf32, #tpu.memory_space<vmem>>, vector<1x4x16xf32>
    %4 = vector.shape_cast %3 : vector<1x4x16xf32> to vector<4x16xf32>
    %c0_6 = arith.constant 0 : index
    %c0_7 = arith.constant 0 : index
    %c0_8 = arith.constant 0 : index
    %5 = vector.load %arg2[%c0_6, %c0_7, %c0_8] : memref<3x4x4xf32, #tpu.memory_space<vmem>>, vector<1x4x4xf32>
    %6 = vector.shape_cast %5 : vector<1x4x4xf32> to vector<4x4xf32>
    %cst_9 = arith.constant dense<0.000000e+00> : vector<4x16xf32>
    %7 = tpu.matmul %6, %4, %cst_9 {dimension_numbers = #tpu.dot_dimension_numbers<[1], [0], [0], [1], [0, 0, 1, 1], [], []>} : vector<4x4xf32>, vector<4x16xf32>, vector<4x16xf32> -> vector<4x16xf32>
    %8 = arith.addf %2, %7 : vector<4x16xf32>
    %c0_10 = arith.constant 0 : index
    %c0_11 = arith.constant 0 : index
    %c1 = arith.constant 1 : index
    %9 = vector.load %arg1[%c0_10, %c0_11, %c1] : memref<1x4x18xf32, #tpu.memory_space<vmem>>, vector<1x4x16xf32>
    %10 = vector.shape_cast %9 : vector<1x4x16xf32> to vector<4x16xf32>
    %c1_12 = arith.constant 1 : index
    %c0_13 = arith.constant 0 : index
    %c0_14 = arith.constant 0 : index
    %11 = vector.load %arg2[%c1_12, %c0_13, %c0_14] : memref<3x4x4xf32, #tpu.memory_space<vmem>>, vector<1x4x4xf32>
    %12 = vector.shape_cast %11 : vector<1x4x4xf32> to vector<4x4xf32>
    %cst_15 = arith.constant dense<0.000000e+00> : vector<4x16xf32>
    %13 = tpu.matmul %12, %10, %cst_15 {dimension_numbers = #tpu.dot_dimension_numbers<[1], [0], [0], [1], [0, 0, 1, 1], [], []>} : vector<4x4xf32>, vector<4x16xf32>, vector<4x16xf32> -> vector<4x16xf32>
    %14 = arith.addf %8, %13 : vector<4x16xf32>
    %c0_16 = arith.constant 0 : index
    %c0_17 = arith.constant 0 : index
    %c2 = arith.constant 2 : index
    %15 = vector.load %arg1[%c0_16, %c0_17, %c2] : memref<1x4x18xf32, #tpu.memory_space<vmem>>, vector<1x4x16xf32>
    %16 = vector.shape_cast %15 : vector<1x4x16xf32> to vector<4x16xf32>
    %c2_18 = arith.constant 2 : index
    %c0_19 = arith.constant 0 : index
    %c0_20 = arith.constant 0 : index
    %17 = vector.load %arg2[%c2_18, %c0_19, %c0_20] : memref<3x4x4xf32, #tpu.memory_space<vmem>>, vector<1x4x4xf32>
    %18 = vector.shape_cast %17 : vector<1x4x4xf32> to vector<4x4xf32>
    %cst_21 = arith.constant dense<0.000000e+00> : vector<4x16xf32>
    %19 = tpu.matmul %18, %16, %cst_21 {dimension_numbers = #tpu.dot_dimension_numbers<[1], [0], [0], [1], [0, 0, 1, 1], [], []>} : vector<4x4xf32>, vector<4x16xf32>, vector<4x16xf32> -> vector<4x16xf32>
    %20 = arith.addf %14, %19 : vector<4x16xf32>
    %c0_22 = arith.constant 0 : index
    %c0_23 = arith.constant 0 : index
    %21 = vector.load %arg3[%c0_22, %c0_23] : memref<4x1xf32, #tpu.memory_space<vmem>>, vector<4x1xf32>
    %22 = vector.broadcast %21 : vector<4x1xf32> to vector<4x16xf32>
    %23 = arith.addf %20, %22 : vector<4x16xf32>
    %24 = arith.negf %23 : vector<4x16xf32>
    %25 = math.exp %24 : vector<4x16xf32>
    %cst_24 = arith.constant 1.000000e+00 : f32
    %26 = vector.broadcast %cst_24 : f32 to vector<4x16xf32>
    %27 = arith.addf %26, %25 : vector<4x16xf32>
    %28 = arith.divf %26, %27 : vector<4x16xf32>
    %29 = arith.mulf %23, %28 : vector<4x16xf32>
    %c0_25 = arith.constant 0 : index
    %c0_26 = arith.constant 0 : index
    %c1_27 = arith.constant 1 : index
    %30 = vector.load %arg7[%c0_25, %c0_26, %c1_27] : memref<1x4x18xf32, #tpu.memory_space<vmem>>, vector<1x4x16xf32>
    %31 = vector.shape_cast %30 : vector<1x4x16xf32> to vector<4x16xf32>
    %32 = vector.shape_cast %29 : vector<4x16xf32> to vector<1x4x16xf32>
    tpu.vector_store %arg7[%c0_25, %c0_26, %c1_27], %32 {strides = array<i32>} : memref<1x4x18xf32, #tpu.memory_space<vmem>>, vector<1x4x16xf32>,
    %cst_28 = arith.constant 0.000000e+00 : f32
    %33 = vector.broadcast %cst_28 : f32 to vector<4x16xf32>
    %c0_29 = arith.constant 0 : index
    %c0_30 = arith.constant 0 : index
    %c0_31 = arith.constant 0 : index
    %34 = vector.load %arg7[%c0_29, %c0_30, %c0_31] : memref<1x4x18xf32, #tpu.memory_space<vmem>>, vector<1x4x16xf32>
    %35 = vector.shape_cast %34 : vector<1x4x16xf32> to vector<4x16xf32>
    %c0_32 = arith.constant 0 : index
    %c0_33 = arith.constant 0 : index
    %c0_34 = arith.constant 0 : index
    %36 = vector.load %arg4[%c0_32, %c0_33, %c0_34] : memref<3x4x4xf32, #tpu.memory_space<vmem>>, vector<1x4x4xf32>
    %37 = vector.shape_cast %36 : vector<1x4x4xf32> to vector<4x4xf32>
    %cst_35 = arith.constant dense<0.000000e+00> : vector<4x16xf32>
    %38 = tpu.matmul %37, %35, %cst_35 {dimension_numbers = #tpu.dot_dimension_numbers<[1], [0], [0], [1], [0, 0, 1, 1], [], []>} : vector<4x4xf32>, vector<4x16xf32>, vector<4x16xf32> -> vector<4x16xf32>
    %39 = arith.addf %33, %38 : vector<4x16xf32>
    %c0_36 = arith.constant 0 : index
    %c0_37 = arith.constant 0 : index
    %c1_38 = arith.constant 1 : index
    %40 = vector.load %arg7[%c0_36, %c0_37, %c1_38] : memref<1x4x18xf32, #tpu.memory_space<vmem>>, vector<1x4x16xf32>
    %41 = vector.shape_cast %40 : vector<1x4x16xf32> to vector<4x16xf32>
    %c1_39 = arith.constant 1 : index
    %c0_40 = arith.constant 0 : index
    %c0_41 = arith.constant 0 : index
    %42 = vector.load %arg4[%c1_39, %c0_40, %c0_41] : memref<3x4x4xf32, #tpu.memory_space<vmem>>, vector<1x4x4xf32>
    %43 = vector.shape_cast %42 : vector<1x4x4xf32> to vector<4x4xf32>
    %cst_42 = arith.constant dense<0.000000e+00> : vector<4x16xf32>
    %44 = tpu.matmul %43, %41, %cst_42 {dimension_numbers = #tpu.dot_dimension_numbers<[1], [0], [0], [1], [0, 0, 1, 1], [], []>} : vector<4x4xf32>, vector<4x16xf32>, vector<4x16xf32> -> vector<4x16xf32>
    %45 = arith.addf %39, %44 : vector<4x16xf32>
    %c0_43 = arith.constant 0 : index
    %c0_44 = arith.constant 0 : index
    %c2_45 = arith.constant 2 : index
    %46 = vector.load %arg7[%c0_43, %c0_44, %c2_45] : memref<1x4x18xf32, #tpu.memory_space<vmem>>, vector<1x4x16xf32>
    %47 = vector.shape_cast %46 : vector<1x4x16xf32> to vector<4x16xf32>
    %c2_46 = arith.constant 2 : index
    %c0_47 = arith.constant 0 : index
    %c0_48 = arith.constant 0 : index
    %48 = vector.load %arg4[%c2_46, %c0_47, %c0_48] : memref<3x4x4xf32, #tpu.memory_space<vmem>>, vector<1x4x4xf32>
    %49 = vector.shape_cast %48 : vector<1x4x4xf32> to vector<4x4xf32>
    %cst_49 = arith.constant dense<0.000000e+00> : vector<4x16xf32>
    %50 = tpu.matmul %49, %47, %cst_49 {dimension_numbers = #tpu.dot_dimension_numbers<[1], [0], [0], [1], [0, 0, 1, 1], [], []>} : vector<4x4xf32>, vector<4x16xf32>, vector<4x16xf32> -> vector<4x16xf32>
    %51 = arith.addf %45, %50 : vector<4x16xf32>
    %c0_50 = arith.constant 0 : index
    %c0_51 = arith.constant 0 : index
    %52 = vector.load %arg5[%c0_50, %c0_51] : memref<4x1xf32, #tpu.memory_space<vmem>>, vector<4x1xf32>
    %53 = vector.broadcast %52 : vector<4x1xf32> to vector<4x16xf32>
    %54 = arith.addf %51, %53 : vector<4x16xf32>
    %c0_52 = arith.constant 0 : index
    %c0_53 = arith.constant 0 : index
    %c1_54 = arith.constant 1 : index
    %55 = vector.load %arg1[%c0_52, %c0_53, %c1_54] : memref<1x4x18xf32, #tpu.memory_space<vmem>>, vector<1x4x16xf32>
    %56 = vector.shape_cast %55 : vector<1x4x16xf32> to vector<4x16xf32>
    %57 = arith.addf %54, %56 : vector<4x16xf32>
    %58 = arith.negf %57 : vector<4x16xf32>
    %59 = math.exp %58 : vector<4x16xf32>
    %cst_55 = arith.constant 1.000000e+00 : f32
    %60 = vector.broadcast %cst_55 : f32 to vector<4x16xf32>
    %61 = arith.addf %60, %59 : vector<4x16xf32>
    %62 = arith.divf %60, %61 : vector<4x16xf32>
    %63 = arith.mulf %57, %62 : vector<4x16xf32>
    %c0_56 = arith.constant 0 : index
    %c0_57 = arith.constant 0 : index
    %c0_58 = arith.constant 0 : index
    %64 = vector.load %arg6[%c0_56, %c0_57, %c0_58] : memref<1x4x16xf32, #tpu.memory_space<vmem>>, vector<1x4x16xf32>
    %65 = vector.shape_cast %64 : vector<1x4x16xf32> to vector<4x16xf32>
    %66 = vector.shape_cast %63 : vector<4x16xf32> to vector<1x4x16xf32>
    tpu.vector_store %arg6[%c0_56, %c0_57, %c0_58], %66 {strides = array<i32>} : memref<1x4x16xf32, #tpu.memory_space<vmem>>, vector<1x4x16xf32>,
    return
  }
  func.func @transform_0(%arg0: i32) -> (i32, i32, i32) {
    %c0_i32 = arith.constant 0 : i32
    %c0_i32_0 = arith.constant 0 : i32
    %c0_i32_1 = arith.constant 0 : i32
    return %arg0, %c0_i32, %c0_i32_0 : i32, i32, i32
  }
  func.func @transform_1(%arg0: i32) -> (i32, i32, i32) {
    %c0_i32 = arith.constant 0 : i32
    %c0_i32_0 = arith.constant 0 : i32
    %c0_i32_1 = arith.constant 0 : i32
    %c0_i32_2 = arith.constant 0 : i32
    return %c0_i32, %c0_i32_0, %c0_i32_1 : i32, i32, i32
  }
  func.func @transform_2(%arg0: i32) -> (i32, i32) {
    %c0_i32 = arith.constant 0 : i32
    %c0_i32_0 = arith.constant 0 : i32
    %c0_i32_1 = arith.constant 0 : i32
    return %c0_i32, %c0_i32_0 : i32, i32
  }
  func.func @transform_3(%arg0: i32) -> (i32, i32, i32) {
    %c0_i32 = arith.constant 0 : i32
    %c0_i32_0 = arith.constant 0 : i32
    %c0_i32_1 = arith.constant 0 : i32
    %c0_i32_2 = arith.constant 0 : i32
    return %c0_i32, %c0_i32_0, %c0_i32_1 : i32, i32, i32
  }
  func.func @transform_4(%arg0: i32) -> (i32, i32) {
    %c0_i32 = arith.constant 0 : i32
    %c0_i32_0 = arith.constant 0 : i32
    %c0_i32_1 = arith.constant 0 : i32
    return %c0_i32, %c0_i32_0 : i32, i32
  }
  func.func @transform_5(%arg0: i32) -> (i32, i32, i32) {
    %c0_i32 = arith.constant 0 : i32
    %c0_i32_0 = arith.constant 0 : i32
    %c0_i32_1 = arith.constant 0 : i32
    return %arg0, %c0_i32, %c0_i32_0 : i32, i32, i32
  }
}

</mosaic_0001>

<bundles_post_ra>
// kernel: tpu_custom_call.1
= control target key start
LH: loop header
LB: loop body
LE: loop exit
PB: predicated region body
PF: predicated region fallthrough
CT: control target
= control target key end

     0   :  { %10 = vsyncpa [#allocation4], 0  ;;  %s1442_s0 = inlined_call_operand.hbm [shape: f32[2,4,18], index: 0, kind: input, shape index: {}]   ;;  %s1443_s1 = inlined_call_operand.vmem [shape: f32[3,4,4], index: 1, kind: input, shape index: {}]   ;;  %s1444_s2 = inlined_call_operand.vmem [shape: f32[4,1], index: 2, kind: input, shape index: {}]   ;;  %s1445_s3 = inlined_call_operand.hbm [shape: f32[3,4,4], index: 3, kind: input, shape index: {}]   ;;  %s1446_s4 = inlined_call_operand.vmem [shape: f32[4,1], index: 4, kind: input, shape index: {}]   ;;  %s1447_s5 = inlined_call_operand.hbm [shape: f32[2,4,16], index: 5, kind: output, shape index: {}]  }
   0x1   :  { %12 = vsyncpa [#allocation4 + $0x1], 0 }
   0x2   :  { %13 = vsyncpa [#allocation7], 0 }
   0x3   :  { %14 = vsyncpa [#allocation5], 0 }
   0x4   :  { %16 = vsyncpa [#allocation5 + $0x1], 0  ;;  %s1187_s18 = smov 0   ;;  %s1189_s19 = smov 0  }
   0x5   :  { %s1191_s20 = smov 0   ;;  %s1193_s21 = smov 0  }
   0x6 LB: > { %s1208_s22 = sadd.s32 4294967295, %s1144_s21   ;;  %s869_s23 = sadd.s32 4294967294, %s1144_s21   ;;  %s1144_s21 = sphi %s1193_s21, %s1467_s21   ;;  %s1140_s20 = sphi %s1191_s20, %s1466_s20   ;;  %s1136_s19 = sphi %s1189_s19, %s1465_s19   ;;  %s1132_s18 = sphi %s1187_s18, %s1464_s18  }
   0x7   : > { %p42_p0 = scmp.ne.s32.totalorder %s1136_s19, %s1132_s18  ;;  %p1448_p1 = scmp.eq.s32.totalorder %s1208_s22, 0 }
   0x8   : > { %p156_p3 = scmp.eq.s32.totalorder %s869_s23, 1  ;;  %p870_p5 = scmp.ge.s32.totalorder %s1144_s21, 1 }
   0x9   : > { %p1217_p4 = por %p1448_p1, %p42_p0  ;;  %p163_p7 = scmp.lt.s32.totalorder %s1144_s21, 3 }
   0xa   : > { %p1222_p6 = por %p156_p3, %p42_p0  ;;  %s1146_s27 = smov [#allocation6]  }
   0xb   : > { %s1451_s24 = scalar_select %p1217_p4, 1, 0 }
   0xc   : > { %s1452_s25 = scalar_select %p1222_p6, 1, 0 }
   0xd   : > { %p1227_p8 = pnand %p870_p5, %p163_p7  ;;  %s181_s28 = sshll.u32 %s1146_s27, 4  ;;  %s1231_s28 = int_to_ptr.vmem [resolvable:$true] %s181_s28 }
   0xe   : > { %s1243_s30 = sadd.s32 1, %s1144_s21   ;;  %s29_s6 = sadd.s32 1, %s1140_s20 }
   0xf   : > { %s1453_s26 = scalar_select %p1227_p8, 1, 0 }
  0x10   : > { %p949_p9 = pneg %p1227_p8  ;;  %s26_s7 = ssub.s32 %s1144_s21, %s1243_s30 }
  0x11   : > { %s1016_s10 = scalar_lea.hbm %s1445_s3, 192 }
  0x12   : > { %p1238_p11 = pnand %p949_p9, %p1448_p1  ;;  %p1017_p12 = scmp.ne.s32.totalorder %s1445_s3, %s1016_s10 }
  0x13   : > { %p1023_p5 = scmp.lt.u32.totalorder %s1016_s10, %s1445_s3 }
  0x14   : > { %p1018_p13 = pneg %p1238_p11 }
  0x16   : > { %p1019_p0 = pnand %p1018_p13, %p1017_p12 }
  0x18   : > { %p1020_p3 = pneg %p1019_p0 }
  0x1a   : > { %p1025_p7 = pnand %p1023_p5, %p1020_p3 }
  0x1c   : > { %1028 = shalt.err (!%p1025_p7)
}
  0x1d   : > { %s1029_s15 = scalar_lea.vmem %s1231_s28, 192  ;;  %p1037_p2 = scmp.lt.s32.totalorder %s1231_s28, %s1231_s28 }
  0x1e   : > { %p1030_p9 = scmp.ne.s32.totalorder %s1231_s28, %s1029_s15  ;;  %p1038_p6 = scmp.lt.s32.totalorder %s1029_s15, %s1029_s15 }
  0x20   : > { %p1032_p10 = pnand %p1030_p9, %p1018_p13  ;;  %p1039_p4 = por %p1038_p6, %p1037_p2 }
  0x22   : > { %p1033_p1 = pneg %p1032_p10 }
  0x24   : > { %p1040_p8 = pnand %p1039_p4, %p1033_p1 }
  0x26   : > { %1043 = shalt.err (!%p1040_p8)
}
  0x27   : > { %s1147_s16 = smov 64   ;;  %s1148_s17 = smov 4  }
  0x28   : > { %952 = dma.hbm_to_vmem [thread:$0]  (!%p1238_p11), %s1445_s3, 192, %s1231_s28, [#allocation7], %s1147_s16, %s1147_s16, %s1148_s17  }
  0x29   : > { %p27_p2 = scmp.eq.s32.totalorder %s26_s7, 0  ;;  %p36_p1 = scmp.ne.s32.totalorder %s1140_s20, %s1136_s19 }
  0x2a   : > { %p37_p4 = scmp.eq.s32.totalorder %s1144_s21, 0  ;;  %p962_p6 = scmp.lt.s32.totalorder %s1144_s21, 2 }
  0x2b   : > { %s1274_s8 = scalar_select %p27_p2, %s1140_s20, %s29_s6  }
  0x2c   : > { %p38_p8 = por %p37_p4, %p36_p1  ;;  %p1455_p10 = scmp.eq.s32.totalorder %s1208_s22, 1 }
  0x2d   : > { %s198_s10 = sand.u32 1, %s1140_s20   ;;  %s874_s11 = sshll.u32 %s1144_s21, 6 }
  0x2e   : > { %p1278_p12 = por %p1455_p10, %p36_p1  ;;  %s873_s12 = sshll.u32 %s198_s10, 2 }
  0x2f   : > { %s1287_s14 = scalar_lea.hbm %s1442_s0, %s874_s11  ;;  %s202_s28 = scalar_lea.vmem [#allocation3], %s873_s12 }
  0x30   : > { %s209_s6 = sshll.u32 %s202_s28, 4  ;;  %p1289_p11 = pnand %p962_p6, %p38_p8  ;;  %s1293_s6 = int_to_ptr.vmem [resolvable:$true] %s209_s6 }
  0x31   : > { %s199_s15 = scalar_lea.sflag [#allocation4], %s198_s10  ;;  %s1044_s16 = scalar_lea.hbm %s1287_s14, 64 }
  0x32   : > { %p1045_p13 = scmp.ne.s32.totalorder %s1287_s14, %s1044_s16  ;;  %p1046_p0 = pneg %p1289_p11 }
  0x33   : > { %s1049_s27 = scalar_lea.hbm %s1442_s0, 128  ;;  %p1050_p7 = scmp.lt.u32.totalorder %s1287_s14, %s1442_s0 }
  0x34   : > { %p1047_p3 = pnand %p1046_p0, %p1045_p13  ;;  %p1051_p9 = scmp.lt.u32.totalorder %s1049_s27, %s1044_s16 }
  0x35   : > { %p1053_p1 = scmp.lt.u32.totalorder %s1044_s16, %s1287_s14 }
  0x36   : > { %p1048_p5 = pneg %p1047_p3  ;;  %p1052_p2 = por %p1051_p9, %p1050_p7 }
  0x38   : > { %p1054_p4 = por %p1053_p1, %p1052_p2 }
  0x3a   : > { %p1055_p6 = pnand %p1054_p4, %p1048_p5 }
  0x3c   : > { %1058 = shalt.err (!%p1055_p6)
}
  0x3d   : > { %s1059_s10 = scalar_lea.vmem %s1293_s6, 64  ;;  %s1149_s29 = smov [#allocation3]  }
  0x3e   : > { %p1060_p8 = scmp.ne.s32.totalorder %s1293_s6, %s1059_s10  ;;  %s1064_s13 = sshll.u32 %s1149_s29, 4  ;;  %s1065_s13 = int_to_ptr.vmem [resolvable:$false] %s1064_s13 }
  0x3f   : > { %s1066_s28 = scalar_lea.vmem %s1065_s13, 128  ;;  %p1067_p3 = scmp.lt.s32.totalorder %s1293_s6, %s1065_s13 }
  0x40   : > { %p1062_p10 = pnand %p1060_p8, %p1046_p0  ;;  %p1068_p7 = scmp.lt.s32.totalorder %s1066_s28, %s1059_s10 }
  0x42   : > { %p1063_p13 = pneg %p1062_p10  ;;  %p1069_p9 = por %p1068_p7, %p1067_p3 }
  0x44   : > { %p1070_p2 = pnand %p1069_p9, %p1063_p13 }
  0x46   : > { %1073 = shalt.err (!%p1070_p2)
}
  0x47   : > { %956 = dma.hbm_to_vmem [thread:$0]  (!%p1289_p11), %s1287_s14, 64, %s1293_s6, %s199_s15  }
  0x48   : > { %p1458_p5 = scmp.ne.s32.totalorder %s1453_s26, 0 }
  0x49   : > { %s1323_s16 = sand.u32 (!%p1458_p5), 1, %s1136_s19   ;;  %p1459_p0 = scmp.ne.s32.totalorder (!%p1458_p5), %s1451_s24, 0 }
  0x4a   : > { %218 = sbr.rel (%p1458_p5) target bundleno = 956 (0x3bc), region = 40  ;;  %s876_s17 = sshll.u32 (!%p1458_p5), %s1323_s16, 2 }
  0x4b   : > { %s221_s23 = scalar_lea.sflag (!%p1458_p5), [#allocation4], %s1323_s16  ;;  %s1329_s27 = scalar_lea.vmem (!%p1458_p5), [#allocation3], %s876_s17 }
  0x51   : > { %1119 = dma.done.wait (%p1459_p0), %s221_s23, 64  }
  0x52   : > { %1121 = vsyncadd (%p1459_p0), %s221_s23, 4294967232  ;;  %p1460_p11 = scmp.eq.s32.totalorder %s1208_s22, 0 }
  0x54   : > { %1123 = dma.done.wait (%p1460_p11), [#allocation7], 192   ;;  %p1461_p1 = pmov %p1460_p11 }
  0x55   : > { %v1150_v0 = vmov 0.0   ;;  %vm1151_vm0 = vmmov 0   ;;  %v1152_v1 = vmov 0   ;;  %vm268_vm1 = vcmask 1043456   ;;  %v257_v2 = vld [vmem:[%s1329_s27] sm:$0xf] }
  0x56   : > { %1125 = vsyncadd (%p1461_p1), [#allocation7], 4294967104  ;;  %911 = vmatprep.subr.mxu0 %v1150_v0  ;;  %916 = vmatprep.subr.mxu1 %v1150_v0  ;;  %vm264_vm2 = vcmask 31744   ;;  %v258_v3 = vld [vmem:[%s1443_s1] sm:$0xf]  ;;  %s1153_s14 = smov 127  }
  0x57   : > { %913 = vmatprep.mubr.msk.f32.mxu0 %vm1151_vm0, %v1150_v0  ;;  %918 = vmatprep.mubr.msk.f32.mxu1 %vm1151_vm0, %v1150_v0  ;;  %v496_v4 = vld [vmem:[%s1444_s2] sm:$0xf]  ;;  %s1154_s15 = smov 126   ;;  %v879_v5 = vld [vmem:[%s1443_s1 + $0x4] sm:$0xf]  ;;  %vm255_vm3 = vcmask 142336  }
  0x58   : > { %1006 = vset.pattern.permute.xlu1 %v1152_v1  ;;  %1007 = vset.pattern.permute.xlu0 %v1152_v1  ;;  %v884_v7 = vld [vmem:[%s1443_s1 + $0x8] sm:$0xf]  ;;  %256 = vst.msk [vmem:[#allocation2] sm:$0xf] %vm255_vm3, %v1150_v0  ;;  %s1155_s13 = smov 1   ;;  %vm514_vm4 = vcmask 134152  }
  0x59   : > { %262 = vrot.lane.b32.xlu0 %v257_v2, %s1153_s14  ;;  %917 = vmatpush3.msk.msra.mxu1 %vm268_vm1, %v257_v2  ;;  %v517_v26 = vld [vmem:[#allocation6] sm:$0xf]  ;;  %v753_v27 = vld [vmem:[%s1446_s4] sm:$0xf]  ;;  %v760_v28 = vld [vmem:[%s1329_s27] sm:$0xf] }
  0x5a   : > { %919 = vmatmul.mubr.msk.f32.vlgmr.msra.gmra.mrb[0].mxu1 %vm264_vm2, %v258_v3  ;;  %499 = vperm.xlu1 %1006, %v496_v4   ;;  %v519_v29 = vld [vmem:[#allocation6 + $0x4] sm:$0xf]  ;;  %v674_v32 = vld [vmem:[#allocation6 + $0x8] sm:$0xf]  ;;  %s896_s27 = sshll.u32 %s1208_s22, 6  ;;  %s254_s24 = scalar_lea.vmem [#allocation8], %s876_s17 }
  0x5b   : > { %926 = vmatprep.subr.mxu1 %v1150_v0  ;;  %928 = vmatprep.mubr.msk.f32.mxu1 %vm1151_vm0, %v1150_v0  ;;  %s789_s26 = sshll.u32 %s254_s24, 4  ;;  %vm773_vm5 = vcmask 125952   ;;  %s1398_s7 = scalar_lea.hbm %s1447_s5, %s896_s27  ;;  %s1400_s26 = int_to_ptr.vmem [resolvable:$true] %s789_s26 }
  0x5c   : > { %s1074_s11 = scalar_lea.vmem %s1400_s26, 64  ;;  %s1156_s22 = smov [#allocation8]  }
  0x5d   : > { %418 = vrot.lane.b32.xlu0 %v257_v2, %s1154_s15  ;;  %p1075_p4 = scmp.ne.s32.totalorder %s1400_s26, %s1074_s11  ;;  %s1078_s17 = sshll.u32 %s1156_s22, 4  ;;  %s1079_s17 = int_to_ptr.vmem [resolvable:$false] %s1078_s17 }
  0x5e   : > { %s1080_s12 = scalar_lea.vmem %s1079_s17, 128  ;;  %p1081_p10 = scmp.lt.s32.totalorder %s1400_s26, %s1079_s17 }
  0x5f   : > { %p1076_p6 = pnand %p1075_p4, %p1278_p12  ;;  %p1082_p13 = scmp.lt.s32.totalorder %s1080_s12, %s1074_s11 }
  0x61   : > { %p1077_p8 = pneg %p1076_p6  ;;  %p1083_p3 = por %p1082_p13, %p1081_p10 }
  0x63   : > { %p1084_p7 = pnand %p1083_p3, %p1077_p8 }
  0xcb   : > { %v263_v6 = vpop.permute.xlu0 %262 }
  0xcc   : > { %912 = vmatpush3.msk.msra.mxu0 %vm268_vm1, %v263_v6 }
  0xcd   : > { %914 = vmatmul.mubr.msk.f32.vlgmr.msra.gmra.mrb[0].mxu0 %vm264_vm2, %v879_v5  ;;  %921 = vmatprep.subr.mxu0 %v1150_v0 }
  0xce   : > { %923 = vmatprep.mubr.msk.f32.mxu0 %vm1151_vm0, %v1150_v0 }
  0xcf   : > { %v419_v8 = vpop.permute.xlu0 %418 }
  0xd0   : > { %922 = vmatpush3.msk.msra.mxu0 %vm268_vm1, %v419_v8 }
  0xd1   : > { %924 = vmatmul.mubr.msk.f32.vlgmr.msra.gmra.mrb[2].mxu0 %vm264_vm2, %v884_v7  ;;  %931 = vmatprep.subr.mxu0 %v1150_v0 }
  0xd2   : > { %933 = vmatprep.mubr.msk.f32.mxu0 %vm1151_vm0, %v1150_v0 }
  0xd9   : > { %v500_v15 = vpop.permute.xlu1 %499 }
 0x12d   : > { %v412_v9 = vpop.f32.mrb[0].mxu1 }
 0x12e   : > { %v920_v10 = vpop.f32.mrb[1].mxu1 }
 0x1a0   : > { %v337_v11 = vpop.f32.mrb[0].mxu0 }
 0x1a1   : > { %v413_v12 = vadd.f32 %v412_v9, %v337_v11  ;;  %v915_v13 = vpop.f32.mrb[1].mxu0 }
 0x1a4   : > { %v491_v14 = vpop.f32.mrb[2].mxu0 }
 0x1a5   : > { %v495_v16 = vadd.f32 %v491_v14, %v413_v12  ;;  %v925_v17 = vpop.f32.mrb[3].mxu0 }
 0x1a7   : > { %v502_v18 = vadd.f32 %v500_v15, %v495_v16 }
 0x1a9   : > { %v887_v19 = vmul.f32 -1.442695, %v502_v18 }
 0x1ab   : > { %1008 = vpow2.f32 %v887_v19 }
 0x1b5   : > { %v1009_v20 = vpop.eup %1008 }
 0x1b6   : > { %v506_v21 = vadd.f32 1.0, %v1009_v20 }
 0x1b8   : > { %1010 = vrcp.f32 %v506_v21 }
 0x1c2   : > { %v1011_v22 = vpop.eup %1010 }
 0x1c3   : > { %v509_v23 = vmul.f32 %v1011_v22, %v502_v18 }
 0x1c5   : > { %511 = vrot.lane.b32.xlu1 %v509_v23, %s1155_s13 }
 0x237   : > { %v512_v24 = vpop.permute.xlu1 %511 }
 0x238   : > { %515 = vst.msk [vmem:[#allocation2] sm:$0xf] %vm514_vm4, %v512_v24 }
 0x23f   : > { %v516_v25 = vld [vmem:[#allocation2] sm:$0xf] }
 0x240   : > { %675 = vrot.lane.b32.xlu1 %v516_v25, %s1154_s15  ;;  %521 = vrot.lane.b32.xlu0 %v516_v25, %s1153_s14  ;;  %s776_s15 = scalar_lea.sflag [#allocation5], %s1323_s16 }
 0x241   : > { %932 = vmatpush3.msk.msra.mxu0 %vm268_vm1, %v516_v25 }
 0x242   : > { %934 = vmatmul.mubr.msk.f32.vlgmr.msra.gmra.mrb[4].mxu0 %vm264_vm2, %v517_v26 }
 0x244   : > { %756 = vperm.xlu0 %1007, %v753_v27   ;;  %762 = vrot.lane.b32.xlu1 %v760_v28, %s1153_s14 }
 0x2b2   : > { %v522_v30 = vpop.permute.xlu0 %521  ;;  %v676_v31 = vpop.permute.xlu1 %675 }
 0x2b3   : > { %927 = vmatpush3.msk.msra.mxu1 %vm268_vm1, %v522_v30 }
 0x2b4   : > { %929 = vmatmul.mubr.msk.f32.vlgmr.msra.gmra.mrb[2].mxu1 %vm264_vm2, %v519_v29  ;;  %936 = vmatprep.subr.mxu1 %v1150_v0 }
 0x2b5   : > { %937 = vmatpush3.msk.msra.mxu1 %vm268_vm1, %v676_v31  ;;  %938 = vmatprep.mubr.msk.f32.mxu1 %vm1151_vm0, %v1150_v0 }
 0x2b6   : > { %v763_v42 = vpop.permute.xlu1 %762 }
 0x2b8   : > { %939 = vmatmul.mubr.msk.f32.vlgmr.msra.gmra.mrb[4].mxu1 %vm264_vm2, %v674_v32 }
 0x2c3   : > { %v757_v39 = vpop.permute.xlu0 %756 }
 0x315   : > { %v669_v33 = vpop.f32.mrb[4].mxu0 }
 0x316   : > { %v935_v34 = vpop.f32.mrb[5].mxu0 }
 0x387   : > { %v594_v35 = vpop.f32.mrb[2].mxu1 }
 0x388   : > { %v670_v36 = vadd.f32 %v669_v33, %v594_v35  ;;  %v930_v37 = vpop.f32.mrb[3].mxu1 }
 0x38b   : > { %v748_v38 = vpop.f32.mrb[4].mxu1 }
 0x38c   : > { %v752_v40 = vadd.f32 %v748_v38, %v670_v36  ;;  %v940_v41 = vpop.f32.mrb[5].mxu1 }
 0x38e   : > { %v759_v43 = vadd.f32 %v757_v39, %v752_v40 }
 0x390   : > { %v765_v44 = vadd.f32 %v763_v42, %v759_v43 }
 0x392   : > { %v894_v45 = vmul.f32 -1.442695, %v765_v44 }
 0x394   : > { %1012 = vpow2.f32 %v894_v45 }
 0x39e   : > { %v1013_v46 = vpop.eup %1012 }
 0x39f   : > { %v769_v47 = vadd.f32 1.0, %v1013_v46 }
 0x3a1   : > { %1014 = vrcp.f32 %v769_v47 }
 0x3ab   : > { %v1015_v48 = vpop.eup %1014 }
 0x3ac   : > { %v772_v49 = vmul.f32 %v1015_v48, %v765_v44 }
 0x3ae   : > { %774 = vst.msk [vmem:[%s254_s24] sm:$0xf] %vm773_vm5, %v772_v49 }
 0x3af   : > { %1087 = shalt.err (!%p1084_p7)
}
 0x3b0   : > { %s1088_s16 = scalar_lea.hbm %s1398_s7, 64  ;;  %s1092_s13 = scalar_lea.hbm %s1447_s5, 128 }
 0x3b1   : > { %p1089_p9 = scmp.ne.s32.totalorder %s1398_s7, %s1088_s16  ;;  %p1093_p0 = scmp.lt.u32.totalorder %s1398_s7, %s1447_s5 }
 0x3b2   : > { %p1094_p11 = scmp.lt.u32.totalorder %s1092_s13, %s1088_s16  ;;  %p1096_p4 = scmp.lt.u32.totalorder %s1088_s16, %s1398_s7 }
 0x3b3   : > { %p1090_p2 = pnand %p1089_p9, %p1278_p12 }
 0x3b4   : > { %p1095_p1 = por %p1094_p11, %p1093_p0 }
 0x3b5   : > { %p1091_p5 = pneg %p1090_p2 }
 0x3b6   : > { %p1097_p6 = por %p1096_p4, %p1095_p1 }
 0x3b8   : > { %p1098_p8 = pnand %p1097_p6, %p1091_p5 }
 0x3ba   : > { %1101 = shalt.err (!%p1098_p8)
}
 0x3bb   : > { %947 = dma.vmem_to_hbm [thread:$0]  (%p1278_p12), %s1400_s26, 64, %s1398_s7, %s776_s15  }
 0x3bc PF: > { %s801_s27 = sand.u32 1, %s1132_s18   ;;  %p1462_p10 = scmp.ne.s32.totalorder %s1452_s25, 0 }
 0x3bd   : > { %p1463_p13 = scmp.ge.s32.totalorder %s1144_s21, 2  ;;  %s802_s24 = scalar_lea.sflag [#allocation5], %s801_s27 }
 0x3bf   : > { %p958_p3 = pnand %p1463_p13, %p1462_p10 }
 0x3c1   : > { %1127 = dma.done.wait (!%p958_p3), %s802_s24, 64  }
 0x3c2   : > { %1129 = vsyncadd (!%p958_p3), %s802_s24, 4294967232  ;;  %p19_p7 = scmp.ge.s32.totalorder %s1243_s30, 4   ;;  %s1464_s18 = smov %s1136_s19 }
 0x3c3   : > { %s1465_s19 = smov %s1140_s20  ;;  %s1466_s20 = smov %s1274_s8 }
 0x3c4   : > { %s1467_s21 = smov %s1243_s30  ;;  %21 = sbr.rel (!%p19_p7) target bundleno = 6 (0x6), region = 93 }
 0x3cb   :  { %807 = vsyncpa [#allocation4], 1 }
 0x3cc   :  { %809 = vsyncpa [#allocation4 + $0x1], 1 }
 0x3cd   :  { %810 = vsyncpa [#allocation7], 1 }
 0x3ce   :  { %811 = vsyncpa [#allocation5], 1 }
 0x3cf   :  { %813 = vsyncpa [#allocation5 + $0x1], 1 }

</bundles_post_ra>
